<compile_context>
chip_gen: v5e
topology: v5e:2x2
jax: 0.10.0
libtpu: 0.0.40
codegen_flags: <defaults>
</compile_context>

<pallas_src>
import jax
import jax.numpy as jnp
import numpy as np
from jax import lax
from jax.experimental import pallas as pl
from jax.experimental.pallas import tpu as pltpu

# ----------------------------------------------------------------------------
# Configuration (small shapes consistent with the module's forward)
# ----------------------------------------------------------------------------
B, CIN, H, W = 2, 4, 16, 16          # x: [B, Cin, H, W]  (NCHW, like PyTorch)
HW = H * W
M = B * HW                           # flattened spatial (b, h, w) -> 512 lanes
K9 = CIN * 9                         # im2col contraction dim -> 36
CMID = 8                             # per-convnet out_dim
NUM_TASKS = 2                        # cur_task == 1 -> aux_fc path exercised
CLASSES = [3, 5]                     # cumulative classes per task
FEAT_DIM = CMID * NUM_TASKS          # 16
NCLS = CLASSES[-1]                   # 5 total logits
AUX_OUT = CLASSES[-1] - CLASSES[-2] + 1   # 3
BP = 128                             # lane width of pool / head / output slab

# ----- packed weight-slab row layout (all offsets are multiples of 8) --------
R_CONV = (1 + NUM_TASKS) * CMID                      # 24: backbone + task convs
R_WP = NUM_TASKS * CMID                              # 16: per-task 1x1 proj
HEAD_ROWS = FEAT_DIM + NCLS + AUX_OUT                # 24: feats | logits | aux
R_HEAD = ((HEAD_ROWS + 7) // 8) * 8                  # 24 (already aligned)

OFF_WCONV = 0
OFF_WP = OFF_WCONV + R_CONV                          # 24
OFF_WR = OFF_WP + R_WP                               # 40
OFF_WHEAD = OFF_WR + CMID                            # 48
OFF_BCONV = OFF_WHEAD + R_HEAD                       # 72
OFF_BR = OFF_BCONV + R_CONV                          # 96
OFF_BHEAD = OFF_BR + CMID                            # 104
SLAB_ROWS = OFF_BHEAD + R_HEAD                       # 128
SLAB_LANES = 128                                     # >= max(K9, FEAT_DIM)


# ----------------------------------------------------------------------------
# The single fused Pallas kernel (everything transposed: channels in sublanes)
# ----------------------------------------------------------------------------
def _fused_forward_kernel(pT_ref, ws_ref, out_ref):
    """Backbone conv -> per-task inc-convnets with CRL recycling -> fused GAP
    -> combined (features | fc heads | aux_fc) matmul, all in [C, M] layout."""

    def mm(a, b):
        return jnp.dot(a, b, preferred_element_type=jnp.float32)

    pT = pT_ref[...]                                       # [K9, M]

    # --- all conv3x3-on-x matmuls share pT: one fused MXU pass ---------------
    wconv = ws_ref[OFF_WCONV:OFF_WCONV + R_CONV, 0:K9]     # [(1+T)*C, K9]
    convx = mm(wconv, pT)                                  # [(1+T)*C, M]

    def cbias(i):   # i = 0 backbone bias, i = 1..T per-task combined (bc+bp)
        r = OFF_BCONV + i * CMID
        return ws_ref[r:r + CMID, 0:1]                     # [C, 1], lane-bcast

    # --- backbone ------------------------------------------------------------
    fmaps = jnp.maximum(convx[0:CMID, :] + cbias(0), 0.0)  # [C, M]

    # --- per-task inc-convnets with CRL fmap recycling -----------------------
    feats = []
    for i in range(NUM_TASKS):
        if i > 0:
            wr = ws_ref[OFF_WR:OFF_WR + CMID, 0:CMID]      # CRL 1x1 mix
            br = ws_ref[OFF_BR:OFF_BR + CMID, 0:1]
            fmaps = jnp.maximum(mm(wr, fmaps) + br, 0.0)
        wp = ws_ref[OFF_WP + i * CMID:OFF_WP + (i + 1) * CMID, 0:CMID]
        cx = convx[(i + 1) * CMID:(i + 2) * CMID, :]
        fmaps = jnp.maximum(cx + mm(wp, fmaps) + cbias(i + 1), 0.0)
        feats.append(fmaps)

    fcat = jnp.concatenate(feats, axis=0)                  # [FEAT_DIM, M]

    # --- global average pool for ALL tasks in one MXU matmul -----------------
    # pool operand is pure structure -> synthesised in-kernel (no DMA):
    # poolT[m, b] = 1/HW iff flattened row m belongs to batch b.
    m_idx = lax.broadcasted_iota(jnp.int32, (M, BP), 0)
    b_idx = lax.broadcasted_iota(jnp.int32, (M, BP), 1)
    in_b = (m_idx >= b_idx * HW) & (m_idx < (b_idx + 1) * HW)
    poolT = jnp.where(in_b, jnp.float32(1.0 / HW), jnp.float32(0.0))
    featT = mm(fcat, poolT)                                # [FEAT_DIM, BP]

    # --- combined head: [identity(features) ; fc blocks ; aux_fc] ------------
    whead = ws_ref[OFF_WHEAD:OFF_WHEAD + R_HEAD, 0:FEAT_DIM]   # [R_HEAD, FEAT]
    bhead = ws_ref[OFF_BHEAD:OFF_BHEAD + R_HEAD, 0:1]          # [R_HEAD, 1]
    out_ref[...] = (mm(whead, featT) + bhead).astype(out_ref.dtype)


# ----------------------------------------------------------------------------
# Wrapper-side packing / im2col (plain JAX; one-time or fused by XLA)
# ----------------------------------------------------------------------------
def im2col_3x3_T(x):
    """x: [B, C, H, W] (NCHW) -> patches^T [C*9, B*H*W], pad=1, stride=1.

    Row order (c, kh, kw) matches torch conv weight.reshape(Cout, -1);
    column order (b, h, w) so each batch owns a contiguous lane range."""
    b, c, h, w = x.shape
    xp = jnp.pad(x, ((0, 0), (0, 0), (1, 1), (1, 1)))
    taps = [xp[:, :, dh:dh + h, dw:dw + w] for dh in range(3) for dw in range(3)]
    p = jnp.stack(taps, axis=0)                 # [9, B, C, H, W]
    p = p.transpose(2, 0, 1, 3, 4)              # [C, 9, B, H, W]
    return p.reshape(c * 9, b * h * w)


def pack_params(params):
    """Pack every weight/bias into ONE [SLAB_ROWS, SLAB_LANES] f32 slab."""
    def convT(wc):                              # [Cout, Cin, 3, 3] -> [Cout, Cin*9]
        return wc.reshape(wc.shape[0], -1)

    slab = jnp.zeros((SLAB_ROWS, SLAB_LANES), jnp.float32)

    # stacked conv-on-x weights: backbone, then each task's convnet
    wconv = jnp.concatenate(
        [convT(params["backbone"]["wc"])]
        + [convT(params["convnets"][i]["wc"]) for i in range(NUM_TASKS)], axis=0)
    slab = slab.at[OFF_WCONV:OFF_WCONV + R_CONV, :K9].set(wconv)

    # per-task 1x1 projection weights, transposed ([in,out] -> [out,in])
    for i in range(NUM_TASKS):
        slab = slab.at[OFF_WP + i * CMID:OFF_WP + (i + 1) * CMID, :CMID].set(
            params["convnets"][i]["wp"].T)

    # CRL 1x1 mixing weight
    slab = slab.at[OFF_WR:OFF_WR + CMID, :CMID].set(params["crl"]["wr"].T)

    # combined head weight/bias:
    #   rows 0:FEAT_DIM            -> identity (features pass-through)
    #   rows FEAT_DIM:FEAT_DIM+NCLS-> fc_list heads (prefix slice = zero cols)
    #   next AUX_OUT rows          -> aux_fc on last task's features
    whead = jnp.zeros((R_HEAD, FEAT_DIM), jnp.float32)
    bhead = jnp.zeros((R_HEAD,), jnp.float32)
    whead = whead.at[:FEAT_DIM, :FEAT_DIM].set(jnp.eye(FEAT_DIM, dtype=jnp.float32))
    row = FEAT_DIM
    for i in range(NUM_TASKS):
        w_i, b_i = params["fc_w"][i], params["fc_b"][i]      # [n_i, CMID*(i+1)]
        n_i, d_i = w_i.shape
        whead = whead.at[row:row + n_i, :d_i].set(w_i)
        bhead = bhead.at[row:row + n_i].set(b_i)
        row += n_i
    whead = whead.at[row:row + AUX_OUT,
                     CMID * (NUM_TASKS - 1):CMID * NUM_TASKS].set(params["aux_w"])
    bhead = bhead.at[row:row + AUX_OUT].set(params["aux_b"])
    slab = slab.at[OFF_WHEAD:OFF_WHEAD + R_HEAD, :FEAT_DIM].set(whead)
    slab = slab.at[OFF_BHEAD:OFF_BHEAD + R_HEAD, 0].set(bhead)

    # conv biases: backbone bc, then per-task combined (bc + bp), then CRL br
    slab = slab.at[OFF_BCONV:OFF_BCONV + CMID, 0].set(params["backbone"]["bc"])
    for i in range(NUM_TASKS):
        cp = params["convnets"][i]
        slab = slab.at[OFF_BCONV + (i + 1) * CMID:OFF_BCONV + (i + 2) * CMID,
                       0].set(cp["bc"] + cp["bp"])
    slab = slab.at[OFF_BR:OFF_BR + CMID, 0].set(params["crl"]["br"])
    return slab


# Whole-array-in-VMEM specs: 2 inputs (patches + packed slab), 1 output slab.
_VSPEC = pl.BlockSpec(memory_space=pltpu.MemorySpace.VMEM)


@jax.jit
def forward(x, wslab):
    """Mirror of RNECompressBaseNet.forward(x, mode=None) — one pallas_call."""
    pT = im2col_3x3_T(x)                        # [K9, M]
    outT = pl.pallas_call(
        _fused_forward_kernel,
        out_shape=jax.ShapeDtypeStruct((R_HEAD, BP), jnp.float32),
        in_specs=[_VSPEC, _VSPEC],
        out_specs=_VSPEC,
    )(pT, wslab)
    # one lane-dense slab: rows = [features | logits | aux], lanes = batch
    feats = outT[0:FEAT_DIM, :B].T
    logits = outT[FEAT_DIM:FEAT_DIM + NCLS, :B].T
    aux = outT[FEAT_DIM + NCLS:FEAT_DIM + NCLS + AUX_OUT, :B].T
    return {"features": feats, "logits": logits, "aux_logits": aux}


# ----------------------------------------------------------------------------
# Deterministic synthetic parameter init (no checkpoint loading)
# ----------------------------------------------------------------------------
def init_params(key):
    ks = iter(jax.random.split(key, 32))

    def w(shape, scale=0.1):
        return scale * jax.random.normal(next(ks), shape, jnp.float32)

    def convnet_params():
        return {"wc": w((CMID, CIN, 3, 3)), "bc": w((CMID,)),
                "wp": w((CMID, CMID)), "bp": w((CMID,))}

    params = {
        "backbone": {"wc": w((CMID, CIN, 3, 3)), "bc": w((CMID,))},
        "convnets": [convnet_params() for _ in range(NUM_TASKS)],
        "crl": {"wr": w((CMID, CMID)), "br": w((CMID,))},
        "fc_w": [], "fc_b": [],
    }
    known = 0
    for t in range(NUM_TASKS):
        new_cls = CLASSES[t] - known
        in_dim = CMID * (t + 1)
        params["fc_w"].append(w((new_cls, in_dim)))
        params["fc_b"].append(w((new_cls,)))
        known = CLASSES[t]
    params["aux_w"] = w((AUX_OUT, CMID))
    params["aux_b"] = w((AUX_OUT,))
    return params


# ----------------------------------------------------------------------------
# Pure-jnp reference (no Pallas) for a sanity check
# ----------------------------------------------------------------------------
def _ref_forward(x, params):
    b, c, h, wdt = x.shape
    pat = im2col_3x3_T(x).T                     # [M, C*9]

    def conv_block(p, fmaps_in):
        cout = p["wc"].shape[0]
        y = pat @ p["wc"].reshape(cout, -1).T + p["bc"]
        if fmaps_in is not None:
            y = y + fmaps_in @ p["wp"] + p["bp"]
        y = jnp.maximum(y, 0.0)                 # fmaps, flat [M, cout]
        feat = y.reshape(b, h * wdt, cout).mean(axis=1)
        return feat, y

    def crl(fm, p):
        return jnp.maximum(fm @ p["wr"] + p["br"], 0.0)

    _, fmb = conv_block(params["backbone"], None)
    feats, fm = [], None
    for i in range(NUM_TASKS):
        src = fmb if i == 0 else crl(fm, params["crl"])
        f, fm = conv_block(params["convnets"][i], src)
        feats.append(f)
    aux = feats[-1] @ params["aux_w"].T + params["aux_b"]
    fc = jnp.concatenate(feats, axis=1)
    logits = []
    for i in range(NUM_TASKS):
        d = CMID * (i + 1)
        logits.append(fc[:, :d] @ params["fc_w"][i].T + params["fc_b"][i])
    return {"features": fc, "logits": jnp.concatenate(logits, axis=1),
            "aux_logits": aux}


# ----------------------------------------------------------------------------
if __name__ == "__main__":
    key = jax.random.PRNGKey(0)
    kx, kp = jax.random.split(key)
    x = jax.random.normal(kx, (B, CIN, H, W), jnp.float32)
    params = init_params(kp)
    wslab = pack_params(params)

    out = forward(x, wslab)
    jax.block_until_ready(out)

    ref = _ref_forward(x, params)
    np.testing.assert_allclose(np.asarray(out["features"]),
                               np.asarray(ref["features"]), rtol=1e-2, atol=1e-2)
    np.testing.assert_allclose(np.asarray(out["logits"]),
                               np.asarray(ref["logits"]), rtol=1e-2, atol=1e-2)
    np.testing.assert_allclose(np.asarray(out["aux_logits"]),
                               np.asarray(ref["aux_logits"]), rtol=1e-2, atol=1e-2)

    assert out["features"].shape == (B, FEAT_DIM)
    assert out["logits"].shape == (B, NCLS)
    assert out["aux_logits"].shape == (B, AUX_OUT)
    print("KERNEL_OK")
</pallas_src>

<mosaic_0001>
module attributes {stable_mosaic.version = 11 : i64} {
  func.func @_fused_forward_kernel(%arg0: memref<36x512xf32, #tpu.memory_space<vmem>>, %arg1: memref<128x128xf32, #tpu.memory_space<vmem>>, %arg2: memref<24x128xf32, #tpu.memory_space<vmem>>) attributes {dimension_semantics = [], scalar_prefetch = 0 : i64, scratch_operands = 0 : i64, tpu.core_type = #tpu.core_type<tc>} {
    %c0 = arith.constant 0 : index
    %c0_0 = arith.constant 0 : index
    %0 = vector.load %arg0[%c0, %c0_0] : memref<36x512xf32, #tpu.memory_space<vmem>>, vector<36x512xf32>
    %c0_1 = arith.constant 0 : index
    %c0_2 = arith.constant 0 : index
    %1 = vector.load %arg1[%c0_1, %c0_2] : memref<128x128xf32, #tpu.memory_space<vmem>>, vector<24x36xf32>
    %cst = arith.constant dense<0.000000e+00> : vector<24x512xf32>
    %2 = tpu.matmul %1, %0, %cst {dimension_numbers = #tpu.dot_dimension_numbers<[1], [0], [0], [1], [0, 0, 1, 1], [], []>} : vector<24x36xf32>, vector<36x512xf32>, vector<24x512xf32> -> vector<24x512xf32>
    %3 = vector.extract_strided_slice %2 {offsets = [0, 0], sizes = [8, 512], strides = [1, 1]} : vector<24x512xf32> to vector<8x512xf32>
    %c72 = arith.constant 72 : index
    %c0_3 = arith.constant 0 : index
    %4 = vector.load %arg1[%c72, %c0_3] : memref<128x128xf32, #tpu.memory_space<vmem>>, vector<8x1xf32>
    %5 = vector.broadcast %4 : vector<8x1xf32> to vector<8x512xf32>
    %6 = arith.addf %3, %5 : vector<8x512xf32>
    %cst_4 = arith.constant 0.000000e+00 : f32
    %7 = vector.broadcast %cst_4 : f32 to vector<8x512xf32>
    %8 = arith.maximumf %6, %7 : vector<8x512xf32>
    %c24 = arith.constant 24 : index
    %c0_5 = arith.constant 0 : index
    %9 = vector.load %arg1[%c24, %c0_5] : memref<128x128xf32, #tpu.memory_space<vmem>>, vector<8x8xf32>
    %10 = vector.extract_strided_slice %2 {offsets = [8, 0], sizes = [8, 512], strides = [1, 1]} : vector<24x512xf32> to vector<8x512xf32>
    %cst_6 = arith.constant dense<0.000000e+00> : vector<8x512xf32>
    %11 = tpu.matmul %9, %8, %cst_6 {dimension_numbers = #tpu.dot_dimension_numbers<[1], [0], [0], [1], [0, 0, 1, 1], [], []>} : vector<8x8xf32>, vector<8x512xf32>, vector<8x512xf32> -> vector<8x512xf32>
    %12 = arith.addf %10, %11 : vector<8x512xf32>
    %c80 = arith.constant 80 : index
    %c0_7 = arith.constant 0 : index
    %13 = vector.load %arg1[%c80, %c0_7] : memref<128x128xf32, #tpu.memory_space<vmem>>, vector<8x1xf32>
    %14 = vector.broadcast %13 : vector<8x1xf32> to vector<8x512xf32>
    %15 = arith.addf %12, %14 : vector<8x512xf32>
    %cst_8 = arith.constant 0.000000e+00 : f32
    %16 = vector.broadcast %cst_8 : f32 to vector<8x512xf32>
    %17 = arith.maximumf %15, %16 : vector<8x512xf32>
    %c40 = arith.constant 40 : index
    %c0_9 = arith.constant 0 : index
    %18 = vector.load %arg1[%c40, %c0_9] : memref<128x128xf32, #tpu.memory_space<vmem>>, vector<8x8xf32>
    %c96 = arith.constant 96 : index
    %c0_10 = arith.constant 0 : index
    %19 = vector.load %arg1[%c96, %c0_10] : memref<128x128xf32, #tpu.memory_space<vmem>>, vector<8x1xf32>
    %cst_11 = arith.constant dense<0.000000e+00> : vector<8x512xf32>
    %20 = tpu.matmul %18, %17, %cst_11 {dimension_numbers = #tpu.dot_dimension_numbers<[1], [0], [0], [1], [0, 0, 1, 1], [], []>} : vector<8x8xf32>, vector<8x512xf32>, vector<8x512xf32> -> vector<8x512xf32>
    %21 = vector.broadcast %19 : vector<8x1xf32> to vector<8x512xf32>
    %22 = arith.addf %20, %21 : vector<8x512xf32>
    %cst_12 = arith.constant 0.000000e+00 : f32
    %23 = vector.broadcast %cst_12 : f32 to vector<8x512xf32>
    %24 = arith.maximumf %22, %23 : vector<8x512xf32>
    %c32 = arith.constant 32 : index
    %c0_13 = arith.constant 0 : index
    %25 = vector.load %arg1[%c32, %c0_13] : memref<128x128xf32, #tpu.memory_space<vmem>>, vector<8x8xf32>
    %26 = vector.extract_strided_slice %2 {offsets = [16, 0], sizes = [8, 512], strides = [1, 1]} : vector<24x512xf32> to vector<8x512xf32>
    %cst_14 = arith.constant dense<0.000000e+00> : vector<8x512xf32>
    %27 = tpu.matmul %25, %24, %cst_14 {dimension_numbers = #tpu.dot_dimension_numbers<[1], [0], [0], [1], [0, 0, 1, 1], [], []>} : vector<8x8xf32>, vector<8x512xf32>, vector<8x512xf32> -> vector<8x512xf32>
    %28 = arith.addf %26, %27 : vector<8x512xf32>
    %c88 = arith.constant 88 : index
    %c0_15 = arith.constant 0 : index
    %29 = vector.load %arg1[%c88, %c0_15] : memref<128x128xf32, #tpu.memory_space<vmem>>, vector<8x1xf32>
    %30 = vector.broadcast %29 : vector<8x1xf32> to vector<8x512xf32>
    %31 = arith.addf %28, %30 : vector<8x512xf32>
    %cst_16 = arith.constant 0.000000e+00 : f32
    %32 = vector.broadcast %cst_16 : f32 to vector<8x512xf32>
    %33 = arith.maximumf %31, %32 : vector<8x512xf32>
    %34 = tpu.concatenate %17, %33 in 0 : vector<8x512xf32>, vector<8x512xf32> -> vector<16x512xf32>
    %35 = tpu.iota {dimensions = array<i32: 0>} : vector<512x128xi32>
    %36 = tpu.iota {dimensions = array<i32: 1>} : vector<512x128xi32>
    %c256_i32 = arith.constant 256 : i32
    %37 = vector.broadcast %c256_i32 : i32 to vector<512x128xi32>
    %38 = arith.muli %36, %37 : vector<512x128xi32>
    %39 = arith.cmpi sge, %35, %38 : vector<512x128xi32>
    %c1_i32 = arith.constant 1 : i32
    %40 = vector.broadcast %c1_i32 : i32 to vector<512x128xi32>
    %41 = arith.addi %36, %40 : vector<512x128xi32>
    %c256_i32_17 = arith.constant 256 : i32
    %42 = vector.broadcast %c256_i32_17 : i32 to vector<512x128xi32>
    %43 = arith.muli %41, %42 : vector<512x128xi32>
    %44 = arith.cmpi slt, %35, %43 : vector<512x128xi32>
    %45 = arith.andi %39, %44 : vector<512x128xi1>
    %cst_18 = arith.constant 3.906250e-03 : f32
    %cst_19 = arith.constant 0.000000e+00 : f32
    %46 = vector.broadcast %cst_18 : f32 to vector<512x128xf32>
    %47 = vector.broadcast %cst_19 : f32 to vector<512x128xf32>
    %48 = arith.select %45, %46, %47 : vector<512x128xi1>, vector<512x128xf32>
    %cst_20 = arith.constant dense<0.000000e+00> : vector<16x128xf32>
    %49 = tpu.matmul %34, %48, %cst_20 {dimension_numbers = #tpu.dot_dimension_numbers<[1], [0], [0], [1], [0, 0, 1, 1], [], []>} : vector<16x512xf32>, vector<512x128xf32>, vector<16x128xf32> -> vector<16x128xf32>
    %c48 = arith.constant 48 : index
    %c0_21 = arith.constant 0 : index
    %50 = vector.load %arg1[%c48, %c0_21] : memref<128x128xf32, #tpu.memory_space<vmem>>, vector<24x16xf32>
    %c104 = arith.constant 104 : index
    %c0_22 = arith.constant 0 : index
    %51 = vector.load %arg1[%c104, %c0_22] : memref<128x128xf32, #tpu.memory_space<vmem>>, vector<24x1xf32>
    %cst_23 = arith.constant dense<0.000000e+00> : vector<24x128xf32>
    %52 = tpu.matmul %50, %49, %cst_23 {dimension_numbers = #tpu.dot_dimension_numbers<[1], [0], [0], [1], [0, 0, 1, 1], [], []>} : vector<24x16xf32>, vector<16x128xf32>, vector<24x128xf32> -> vector<24x128xf32>
    %53 = vector.broadcast %51 : vector<24x1xf32> to vector<24x128xf32>
    %54 = arith.addf %52, %53 : vector<24x128xf32>
    %c0_24 = arith.constant 0 : index
    %c0_25 = arith.constant 0 : index
    %55 = vector.load %arg2[%c0_24, %c0_25] : memref<24x128xf32, #tpu.memory_space<vmem>>, vector<24x128xf32>
    tpu.vector_store %arg2[%c0_24, %c0_25], %54 {strides = array<i32>} : memref<24x128xf32, #tpu.memory_space<vmem>>, vector<24x128xf32>,
    return
  }
}

</mosaic_0001>

<bundles_post_ra>
// kernel: forward.1
= control target key start
LH: loop header
LB: loop body
LE: loop exit
PB: predicated region body
PF: predicated region fallthrough
CT: control target
= control target key end

     0   :  { %vm44_vm0 = vcmask 1043456   ;;  %v1061_v3 = vmov 0   ;;  %vm34_vm1 = vcmask 293888   ;;  %vm1994_vm2 = vcmask 64512   ;;  %s1991_s0 = inlined_call_operand.vmem [shape: f32[36,512], index: 0, kind: input, shape index: {}]   ;;  %s1992_s1 = inlined_call_operand.vmem [shape: f32[128,128], index: 1, kind: input, shape index: {}]   ;;  %s1993_s2 = inlined_call_operand.vmem [shape: f32[24,128], index: 2, kind: output, shape index: {}]  }
   0x1   :  { %v27_v0 = vld [vmem:[%s1991_s0 + $0x80] sm:$0xf]  ;;  %v30_v1 = vld [vmem:[%s1991_s0 + $0x98] sm:$0xf]  ;;  %1058 = vset.pattern.permute.xlu0 %v1061_v3  ;;  %1059 = vset.pattern.permute.xlu1 %v1061_v3  ;;  %v29_v8 = vld [vmem:[%s1991_s0 + $0x90] sm:$0xf] }
   0x2   :  { %v23_v2 = vld [vmem:[%s1991_s0 + $0x60] sm:$0xff]  ;;  %956 = vmatpush.msk.msra.mxu0 %vm44_vm0, %v27_v0  ;;  %1051 = vmatpush.msk.msra.mxu1 %vm44_vm0, %v27_v0  ;;  %v26_v4 = vld [vmem:[%s1991_s0 + $0x78] sm:$0xff]  ;;  %v25_v10 = vld [vmem:[%s1991_s0 + $0x70] sm:$0xff] }
   0x3   :  { %968 = vmatpush.msk.msra.mxu3 %vm44_vm0, %v30_v1  ;;  %v19_v5 = vld [vmem:[%s1991_s0 + $0x40] sm:$0xff]  ;;  %1060 = vset.pattern.permute.xlu2 %v1061_v3  ;;  %v22_v6 = vld [vmem:[%s1991_s0 + $0x58] sm:$0xff]  ;;  %v32_v14 = vld [vmem:[%s1992_s1 + $0x8] sm:$0xff] }
   0x4   :  { %69 = vmatpush.msra.mxu0 %v23_v2  ;;  %1052 = vmatpush.msra.mxu1 %v23_v2  ;;  %v15_v7 = vld [vmem:[%s1991_s0 + $0x20] sm:$0xff]  ;;  %v18_v9 = vld [vmem:[%s1991_s0 + $0x38] sm:$0xff]  ;;  %v21_v15 = vld [vmem:[%s1991_s0 + $0x50] sm:$0xff] }
   0x5   :  { %147 = vmatpush.msra.mxu3 %v26_v4  ;;  %v11_v11 = vld [vmem:[%s1991_s0] sm:$0xff]  ;;  %964 = vmatpush.msk.msra.mxu2 %vm44_vm0, %v29_v8  ;;  %v14_v12 = vld [vmem:[%s1991_s0 + $0x18] sm:$0xff]  ;;  %v28_v16 = vld [vmem:[%s1991_s0 + $0x88] sm:$0xf]  ;;  %v474_v4 = vlaneseq }
   0x6   :  { %70 = vmatpush.msra.mxu0 %v19_v5  ;;  %1053 = vmatpush.msra.mxu1 %v19_v5  ;;  %v31_v13 = vld [vmem:[%s1992_s1] sm:$0xff]  ;;  %v161_v17 = vld [vmem:[%s1992_s1 + $0x48] sm:$0xff]  ;;  %v17_v18 = vld [vmem:[%s1991_s0 + $0x30] sm:$0xff] }
   0x7   :  { %148 = vmatpush.msra.mxu3 %v22_v6  ;;  %121 = vmatpush.msra.mxu2 %v25_v10  ;;  %v24_v19 = vld [vmem:[%s1991_s0 + $0x68] sm:$0xff]  ;;  %v13_v20 = vld [vmem:[%s1991_s0 + $0x10] sm:$0xff]  ;;  %v897_v26 = vld [vmem:[%s1992_s1 + $0x78] sm:$0xff]  ;;  %v540_v5 = vand.u32 127, %v474_v4  ;;  %v1219_v6 = vshrl.u32 %v474_v4, 7 }
   0x8   :  { %71 = vmatpush.msra.mxu0 %v15_v7  ;;  %1054 = vmatpush.msra.mxu1 %v15_v7  ;;  %v20_v21 = vld [vmem:[%s1991_s0 + $0x48] sm:$0xff]  ;;  %v33_v23 = vld [vmem:[%s1992_s1 + $0x10] sm:$0xff]  ;;  %v175_v32 = vld [vmem:[%s1992_s1 + $0x18] sm:$0xff] }
   0x9   :  { %149 = vmatpush.msra.mxu3 %v18_v9  ;;  %122 = vmatpush.msra.mxu2 %v21_v15  ;;  %v16_v22 = vld [vmem:[%s1991_s0 + $0x28] sm:$0xff]  ;;  %v264_v25 = vld [vmem:[%s1992_s1 + $0x50] sm:$0xff]  ;;  %v279_v43 = vld [vmem:[%s1992_s1 + $0x60] sm:$0xff]  ;;  %v606_v7 = vadd.s32 1, %v540_v5  ;;  %v490_v8 = vadd.s32 120, %v1219_v6  ;;  %v1222_v9 = vmul.u32 256, %v540_v5 }
   0xa   :  { %72 = vmatpush.msra.mxu0 %v11_v11  ;;  %1055 = vmatpush.msra.mxu1 %v11_v11  ;;  %v12_v24 = vld [vmem:[%s1991_s0 + $0x8] sm:$0xff]  ;;  %v460_v53 = vld [vmem:[%s1992_s1 + $0x58] sm:$0xff] }
   0xb   :  { %150 = vmatpush.msra.mxu3 %v14_v12  ;;  %957 = vmatmul.msk.f32.vlgmr.msra.gmra.mxu0 %vm34_vm1, %v31_v13  ;;  %v278_v52 = vld [vmem:[%s1992_s1 + $0x28] sm:$0xff]  ;;  %v1224_v10 = vmul.u32 256, %v606_v7  ;;  %v489_v12 = vadd.s32 112, %v1219_v6  ;;  %vm557_vm3 = vcmp.ge.s32.totalorder %v490_v8, %v1222_v9  ;;  %v2119_v7 = vmov 0 }
   0xc   :  { %958 = vmatmul.msk.f32.vlgmr.msra.gmra.mxu1 %vm34_vm1, %v32_v14  ;;  %969 = vmatmul.msk.f32.vlgmr.msra.gmra.mxu3 %vm34_vm1, %v31_v13 }
   0xd   :  { %960 = vmatpush.msk.msrb.mxu1 %vm44_vm0, %v28_v16  ;;  %164 = vperm.xlu0 %1058, %v161_v17   ;;  %vm623_vm4 = vcmp.lt.s32.totalorder %v490_v8, %v1224_v10  ;;  %v487_v16 = vadd.s32 96, %v1219_v6  ;;  %v486_v17 = vadd.s32 88, %v1219_v6  ;;  %vm556_vm5 = vcmp.ge.s32.totalorder %v489_v12, %v1222_v9 }
   0xe   :  { %123 = vmatpush.msra.mxu2 %v17_v18  ;;  %282 = vperm.xlu1 %1059, %v279_v43   ;;  %vm622_vm6 = vcmp.lt.s32.totalorder %v489_v12, %v1224_v10  ;;  %vm687_vm7 = vmand %vm557_vm3, %vm623_vm4  ;;  %v2037_v8 = vmov 0  ;;  %v502_v12 = vadd.s32 216, %v1219_v6  ;;  %v528_v43 = vadd.s32 424, %v1219_v6 }
   0xf   :  { %95 = vmatpush.msrb.mxu1 %v24_v19  ;;  %v1238_v19 = vld [vmem:[%s1992_s1 + $0x20] sm:$0xff]  ;;  %vm554_vm10 = vcmp.ge.s32.totalorder %v487_v16, %v1222_v9  ;;  %vm620_vm11 = vcmp.lt.s32.totalorder %v487_v16, %v1224_v10  ;;  %vm686_vm12 = vmand %vm556_vm5, %vm622_vm6  ;;  %vm553_vm13 = vcmp.ge.s32.totalorder %v486_v17, %v1222_v9  ;;  %vm619_vm14 = vcmp.lt.s32.totalorder %v486_v17, %v1224_v10 }
  0x10   :  { %124 = vmatpush.msra.mxu2 %v13_v20  ;;  %v485_v20 = vadd.s32 80, %v1219_v6  ;;  %vm1262_vm3 = vmand %vm554_vm10, %vm620_vm11  ;;  %v2045_v17 = vmov 0 }
  0x11   :  { %96 = vmatpush.msrb.mxu1 %v20_v21  ;;  %965 = vmatmul.msk.f32.vlgmr.msra.gmra.mxu2 %vm34_vm1, %v31_v13  ;;  %v484_v21 = vadd.s32 72, %v1219_v6  ;;  %vm1270_vm6 = vmand %vm553_vm13, %vm619_vm14 }
  0x12   :  { %vm552_vm0 = vcmp.ge.s32.totalorder %v485_v20, %v1222_v9 }
  0x13   :  { %97 = vmatpush.msrb.mxu1 %v16_v22  ;;  %v483_v22 = vadd.s32 64, %v1219_v6  ;;  %vm551_vm4 = vcmp.ge.s32.totalorder %v484_v21, %v1222_v9  ;;  %vm617_vm5 = vcmp.lt.s32.totalorder %v484_v21, %v1224_v10 }
  0x14   :  { %959 = vmatmul.msk.f32.gmra.mxu1 %vm34_vm1, %v33_v23  ;;  %970 = vmatmul.msk.f32.gmra.mxu3 %vm34_vm1, %v32_v14 }
  0x15   :  { %98 = vmatpush.msrb.mxu1 %v12_v24  ;;  %267 = vperm.xlu0 %1058, %v264_v25   ;;  %v1062_v24 = vmov 0.00390625  }
  0x16   :  { %463 = vperm.xlu1 %1059, %v460_v53  }
  0x19   :  { %966 = vmatmul.msk.f32.gmra.mxu2 %vm34_vm1, %v32_v14 }
  0x1c   :  { %961 = vmatmul.msk.f32.vlgmr.msrb.gmra.mxu1 %vm34_vm1, %v31_v13  ;;  %971 = vmatmul.msk.f32.gmra.mxu3 %vm34_vm1, %v33_v23 }
  0x1d   :  { %910 = vperm.xlu0 %1058, %v897_v26   ;;  %v481_v26 = vadd.s32 48, %v1219_v6 }
  0x1f   :  { %vm548_vm13 = vcmp.ge.s32.totalorder %v481_v26, %v1222_v9  ;;  %vm614_vm14 = vcmp.lt.s32.totalorder %v481_v26, %v1224_v10  ;;  %v500_v26 = vadd.s32 200, %v1219_v6 }
  0x21   :  { %967 = vmatmul.msk.f32.gmra.mxu2 %vm34_vm1, %v33_v23 }
  0x24   :  { %962 = vmatmul.msk.f32.gmra.mxu1 %vm34_vm1, %v32_v14  ;;  %v488_v14 = vadd.s32 104, %v1219_v6 }
  0x26   :  { %vm555_vm8 = vcmp.ge.s32.totalorder %v488_v14, %v1222_v9  ;;  %vm621_vm9 = vcmp.lt.s32.totalorder %v488_v14, %v1224_v10 }
  0x27   :  { %vm1255_vm15 = vmand %vm555_vm8, %vm621_vm9  ;;  %vm616_vm8 = vcmp.lt.s32.totalorder %v483_v22, %v1224_v10 }
  0x2c   :  { %963 = vmatmul.msk.f32.gmra.mxu1 %vm34_vm1, %v33_v23  ;;  %v482_v23 = vadd.s32 56, %v1219_v6  ;;  %vm618_vm1 = vcmp.lt.s32.totalorder %v485_v20, %v1224_v10  ;;  %v501_v20 = vadd.s32 208, %v1219_v6 }
  0x2d   :  { %vm1277_vm9 = vmand %vm552_vm0, %vm618_vm1 }
  0x2e   :  { %vm549_vm10 = vcmp.ge.s32.totalorder %v482_v23, %v1222_v9  ;;  %vm615_vm11 = vcmp.lt.s32.totalorder %v482_v23, %v1224_v10  ;;  %v531_v23 = vadd.s32 448, %v1219_v6 }
  0x7f   :  { %v165_v27 = vpop.permute.xlu0 %164 }
  0x80   :  { %v1226_v11 = vpop.permute.xlu1 %282 }
  0x87   :  { %v268_v47 = vpop.permute.xlu0 %267 }
  0x88   :  { %v74_v28 = vpop.f32.mrf.mxu0 }
  0x89   :  { %v167_v29 = vadd.f32 %v165_v27, %v74_v28  ;;  %v77_v30 = vpop.f32.mrf.mxu1  ;;  %v538_v28 = vadd.s32 504, %v1219_v6 }
  0x8b   :  { %v171_v31 = vmax.f32 %v167_v29, 0.0  ;;  %vm605_vm1 = vcmp.ge.s32.totalorder %v538_v28, %v1222_v9  ;;  %v530_v29 = vadd.s32 440, %v1219_v6 }
  0x8d   :  { %195 = vmatpush.msrb.mxu0 %v171_v31  ;;  %v499_v31 = vadd.s32 192, %v1219_v6 }
  0x8e   :  { %972 = vmatmul.msk.f32.vlgmr.msrb.gmra.mxu0 %vm1994_vm2, %v175_v32 }
  0x8f   :  { %v152_v33 = vpop.f32.mrf.mxu3 }
  0x90   :  { %v170_v34 = vadd.f32 %v165_v27, %v152_v33  ;;  %v479_v33 = vadd.s32 32, %v1219_v6 }
  0x91   :  { %v1177_v35 = vpop.f32.mrf.mxu1 }
  0x92   :  { %v174_v36 = vmax.f32 %v170_v34, 0.0  ;;  %v2074_v34 = vmov 0 }
  0x94   :  { %255 = vmatpush.msrb.mxu3 %v174_v36  ;;  %v126_v37 = vpop.f32.mrf.mxu2  ;;  %v506_v36 = vadd.s32 248, %v1219_v6 }
  0x95   :  { %975 = vmatmul.msk.f32.vlgmr.msrb.gmra.mxu3 %vm1994_vm2, %v175_v32  ;;  %v169_v38 = vadd.f32 %v165_v27, %v126_v37  ;;  %v512_v37 = vadd.s32 296, %v1219_v6 }
  0x97   :  { %v173_v42 = vmax.f32 %v169_v38, 0.0  ;;  %v155_v44 = vpop.f32.mrf.mxu3  ;;  %v536_v38 = vadd.s32 488, %v1219_v6 }
  0x99   :  { %v100_v39 = vpop.f32.mrf.mxu1 }
  0x9a   :  { %v168_v40 = vadd.f32 %v165_v27, %v100_v39 }
  0x9c   :  { %v172_v41 = vmax.f32 %v168_v40, 0.0  ;;  %v129_v50 = vpop.f32.mrf.mxu2  ;;  %v510_v40 = vadd.s32 280, %v1219_v6 }
  0x9e   :  { %215 = vmatpush.msrb.mxu2 %v172_v41  ;;  %v478_v41 = vadd.s32 24, %v1219_v6 }
  0x9f   :  { %973 = vmatmul.msk.f32.vlgmr.msrb.gmra.mxu2 %vm1994_vm2, %v175_v32  ;;  %v1187_v49 = vpop.f32.mrf.mxu3 }
  0xa0   :  { %235 = vmatpush.msra.mxu2 %v173_v42  ;;  %v505_v42 = vadd.s32 240, %v1219_v6 }
  0xa1   :  { %v103_v59 = vpop.f32.mrf.mxu1 }
  0xa4   :  { %v1199_v55 = vpop.f32.mrf.mxu2 }
  0xa7   :  { %974 = vmatmul.msk.f32.vlgmr.msra.gmra.mxu2 %vm1994_vm2, %v175_v32  ;;  %v537_v32 = vadd.s32 496, %v1219_v6 }
  0xa9   :  { %v1305_v39 = vpop.f32.mrf.mxu1 }
 0x10b   :  { %v197_v45 = vpop.f32.mrf.mxu0 }
 0x10c   :  { %v260_v46 = vadd.f32 %v197_v45, %v77_v30  ;;  %v480_v30 = vadd.s32 40, %v1219_v6  ;;  %v497_v45 = vadd.s32 176, %v1219_v6 }
 0x10e   :  { %v1185_v48 = vadd.f32 %v268_v47, %v260_v46  ;;  %v477_v46 = vadd.s32 16, %v1219_v6 }
 0x110   :  { %v274_v51 = vmax.f32 %v1185_v48, 0.0 }
 0x112   :  { %303 = vmatpush.msra.mxu0 %v274_v51 }
 0x113   :  { %976 = vmatmul.msk.f32.vlgmr.msra.gmra.mxu0 %vm1994_vm2, %v278_v52 }
 0x118   :  { %v257_v54 = vpop.f32.mrf.mxu3 }
 0x119   :  { %v263_v56 = vadd.f32 %v257_v54, %v155_v44  ;;  %v535_v44 = vadd.s32 480, %v1219_v6  ;;  %v476_v54 = vadd.s32 8, %v1219_v6 }
 0x11b   :  { %v1201_v57 = vadd.f32 %v268_v47, %v263_v56 }
 0x11d   :  { %v277_v58 = vmax.f32 %v1201_v57, 0.0  ;;  %v509_v57 = vadd.s32 272, %v1219_v6 }
 0x11f   :  { %363 = vmatpush.msra.mxu3 %v277_v58 }
 0x120   :  { %979 = vmatmul.msk.f32.vlgmr.msra.gmra.mxu3 %vm1994_vm2, %v278_v52 }
 0x122   :  { %v217_v60 = vpop.f32.mrf.mxu2 }
 0x123   :  { %v261_v61 = vadd.f32 %v217_v60, %v103_v59  ;;  %v503_v59 = vadd.s32 224, %v1219_v6 }
 0x125   :  { %v1207_v62 = vadd.f32 %v268_v47, %v261_v61  ;;  %v2021_v61 = vmov 0 }
 0x127   :  { %v275_v63 = vmax.f32 %v1207_v62, 0.0  ;;  %v507_v62 = vadd.s32 256, %v1219_v6 }
 0x129   :  { %323 = vmatpush.msra.mxu1 %v275_v63 }
 0x12a   :  { %v237_v0 = vpop.f32.mrf.mxu2  ;;  %977 = vmatmul.msk.f32.vlgmr.msra.gmra.mxu1 %vm1994_vm2, %v278_v52 }
 0x12b   :  { %v262_v1 = vadd.f32 %v237_v0, %v129_v50  ;;  %v2025_v0 = vmov 0 }
 0x12d   :  { %v1213_v2 = vadd.f32 %v268_v47, %v262_v1  ;;  %v504_v47 = vadd.s32 232, %v1219_v6  ;;  %v533_v1 = vadd.s32 464, %v1219_v6 }
 0x12f   :  { %v276_v3 = vmax.f32 %v1213_v2, 0.0 }
 0x131   :  { %343 = vmatpush.msrb.mxu2 %v276_v3 }
 0x132   :  { %978 = vmatmul.msk.f32.vlgmr.msrb.gmra.mxu2 %vm1994_vm2, %v278_v52  ;;  %v534_v52 = vadd.s32 472, %v1219_v6 }
 0x190   :  { %v305_v13 = vpop.f32.mrf.mxu0 }
 0x191   :  { %v306_v15 = vadd.f32 %v305_v13, %v1226_v11 }
 0x193   :  { %v368_v18 = vmax.f32 %v306_v15, 0.0  ;;  %v532_v15 = vadd.s32 456, %v1219_v6 }
 0x195   :  { %391 = vmatpush.msrb.mxu0 %v368_v18  ;;  %v493_v18 = vadd.s32 144, %v1219_v6 }
 0x196   :  { %980 = vmatmul.msk.f32.vlgmr.msrb.gmra.mxu0 %vm1994_vm2, %v1238_v19  ;;  %vm671_vm2 = vcmp.lt.s32.totalorder %v538_v28, %v1224_v10  ;;  %v515_v28 = vadd.s32 320, %v1219_v6 }
 0x197   :  { %984 = vmatpush.msk.msra.mxu0 %vm687_vm7, %v1062_v24  ;;  %vm550_vm7 = vcmp.ge.s32.totalorder %v483_v22, %v1222_v9  ;;  %v2053_v22 = vmov 0 }
 0x198   :  { %vm1295_vm0 = vmand %vm550_vm7, %vm616_vm8  ;;  %vm670_vm8 = vcmp.lt.s32.totalorder %v537_v32, %v1224_v10 }
 0x199   :  { %985 = vmatpush.msk.msra.mxu0 %vm686_vm12, %v1062_v24  ;;  %vm1288_vm12 = vmand %vm551_vm4, %vm617_vm5  ;;  %vm547_vm4 = vcmp.ge.s32.totalorder %v480_v30, %v1222_v9  ;;  %vm613_vm5 = vcmp.lt.s32.totalorder %v480_v30, %v1224_v10  ;;  %v491_v30 = vadd.s32 128, %v1219_v6 }
 0x19a   :  { %vm1317_vm7 = vmand %vm548_vm13, %vm614_vm14  ;;  %vm612_vm13 = vcmp.lt.s32.totalorder %v479_v33, %v1224_v10 }
 0x19b   :  { %986 = vmatpush.msk.msra.mxu0 %vm1255_vm15, %v1062_v24  ;;  %vm1309_vm15 = vmand %vm549_vm10, %vm615_vm11 }
 0x19c   :  { %vm1332_vm11 = vmand %vm605_vm1, %vm671_vm2  ;;  %vm2023_vm1 = vcmp.lt.s32.totalorder %v536_v38, %v1224_v10  ;;  %vm2031_vm2 = vcmp.lt.s32.totalorder %v505_v42, %v1224_v10 }
 0x19d   :  { %987 = vmatpush.msk.msra.mxu0 %vm1262_vm3, %v1062_v24  ;;  %vm604_vm3 = vcmp.ge.s32.totalorder %v537_v32, %v1222_v9  ;;  %vm1342_vm10 = vmand %vm547_vm4, %vm613_vm5  ;;  %v514_v32 = vadd.s32 312, %v1219_v6 }
 0x19e   :  { %vm1357_vm4 = vmand %vm604_vm3, %vm670_vm8  ;;  %vm2024_vm8 = vcmp.ge.s32.totalorder %v536_v38, %v1222_v9  ;;  %v498_v38 = vadd.s32 184, %v1219_v6 }
 0x19f   :  { %988 = vmatpush.msk.msra.mxu0 %vm1270_vm6, %v1062_v24  ;;  %vm639_vm6 = vcmp.lt.s32.totalorder %v506_v36, %v1224_v10  ;;  %vm1392_vm5 = vmand %vm2024_vm8, %vm2023_vm1  ;;  %vm2043_vm8 = vcmp.lt.s32.totalorder %v504_v47, %v1224_v10 }
 0x1a0   :  { %v2026_v0 = vsel %vm1392_vm5, 4294967295, %v2025_v0 }
 0x1a1   :  { %989 = vmatpush.msk.msra.mxu0 %vm1277_vm9, %v1062_v24  ;;  %vm2017_vm9 = vcmp.ge.s32.totalorder %v479_v33, %v1222_v9  ;;  %v522_v33 = vadd.s32 376, %v1219_v6 }
 0x1a2   :  { %vm1369_vm14 = vmand %vm2017_vm9, %vm612_vm13  ;;  %vm2020_vm13 = vcmp.ge.s32.totalorder %v506_v36, %v1222_v9  ;;  %v529_v36 = vadd.s32 432, %v1219_v6 }
 0x1a3   :  { %v365_v60 = vpop.f32.mrf.mxu3  ;;  %990 = vmatpush.msk.msra.mxu0 %vm1288_vm12, %v1062_v24  ;;  %vm1384_vm9 = vmand %vm2020_vm13, %vm639_vm6  ;;  %vm2027_vm6 = vcmp.lt.s32.totalorder %v478_v41, %v1224_v10  ;;  %vm2028_vm13 = vcmp.ge.s32.totalorder %v478_v41, %v1222_v9  ;;  %vm2032_vm12 = vcmp.ge.s32.totalorder %v505_v42, %v1222_v9  ;;  %v521_v41 = vadd.s32 368, %v1219_v6 }
 0x1a4   :  { %v2022_v61 = vsel %vm1384_vm9, 4294967295, %v2021_v61  ;;  %v366_v4 = vadd.f32 %v365_v60, %v1226_v11  ;;  %vm1405_vm9 = vmand %vm2028_vm13, %vm2027_vm6  ;;  %vm2035_vm6 = vcmp.lt.s32.totalorder %v535_v44, %v1224_v10  ;;  %vm2036_vm13 = vcmp.ge.s32.totalorder %v535_v44, %v1222_v9 }
 0x1a5   :  { %991 = vmatpush.msk.msra.mxu0 %vm1295_vm0, %v1062_v24  ;;  %vm1419_vm5 = vmand %vm2032_vm12, %vm2031_vm2  ;;  %vm2039_vm2 = vcmp.lt.s32.totalorder %v477_v46, %v1224_v10  ;;  %vm2040_vm12 = vcmp.ge.s32.totalorder %v477_v46, %v1222_v9  ;;  %vm2044_vm0 = vcmp.ge.s32.totalorder %v504_v47, %v1222_v9  ;;  %v2091_v44 = vmov 0 }
 0x1a6   :  { %vm1427_vm1 = vmand %vm2036_vm13, %vm2035_vm6  ;;  %v371_v13 = vmax.f32 %v366_v4, 0.0  ;;  %vm2055_vm13 = vcmask 64512   ;;  %v520_v47 = vadd.s32 360, %v1219_v6  ;;  %v519_v60 = vadd.s32 352, %v1219_v6 }
 0x1a7   :  { %v2038_v8 = vsel %vm1427_vm1, 4294967295, %v2037_v8  ;;  %vm1438_vm3 = vmand %vm2040_vm12, %vm2039_vm2  ;;  %v325_v16 = vpop.f32.mrf.mxu1  ;;  %992 = vmatpush.msk.msra.mxu0 %vm1309_vm15, %v1062_v24  ;;  %vm2047_vm2 = vcmp.lt.s32.totalorder %v534_v52, %v1224_v10  ;;  %vm2048_vm12 = vcmp.ge.s32.totalorder %v534_v52, %v1222_v9  ;;  %v527_v52 = vadd.s32 416, %v1219_v6 }
 0x1a8   :  { %vm1452_vm1 = vmand %vm2044_vm0, %vm2043_vm8  ;;  %v326_v21 = vadd.f32 %v325_v16, %v1226_v11  ;;  %451 = vmatpush.msrb.mxu3 %v371_v13  ;;  %vm2051_vm8 = vcmp.lt.s32.totalorder %v476_v54, %v1224_v10  ;;  %vm2052_vm0 = vcmp.ge.s32.totalorder %v476_v54, %v1222_v9  ;;  %v496_v54 = vadd.s32 168, %v1219_v6 }
 0x1a9   :  { %v2046_v17 = vsel %vm1452_vm1, 4294967295, %v2045_v17  ;;  %vm1460_vm6 = vmand %vm2048_vm12, %vm2047_vm2  ;;  %983 = vmatmul.msk.f32.vlgmr.msrb.gmra.mxu3 %vm2055_vm13, %v1238_v19  ;;  %993 = vmatpush.msk.msra.mxu0 %vm1317_vm7, %v1062_v24  ;;  %vm635_vm12 = vcmp.lt.s32.totalorder %v502_v12, %v1224_v10  ;;  %vm2060_vm7 = vcmp.lt.s32.totalorder %v533_v1, %v1224_v10  ;;  %vm2061_vm13 = vcmp.ge.s32.totalorder %v533_v1, %v1222_v9 }
 0x1aa   :  { %vm1472_vm1 = vmand %vm2052_vm0, %vm2051_vm8  ;;  %vm2056_vm8 = vcmp.lt.s32.totalorder %v503_v59, %v1224_v10  ;;  %vm2057_vm0 = vcmp.ge.s32.totalorder %v503_v59, %v1222_v9  ;;  %v369_v27 = vmax.f32 %v326_v21, 0.0  ;;  %1032 = vmatpush.msk.msra.mxu3 %vm1332_vm11, %v1062_v24  ;;  %vm2064_vm11 = vcmp.lt.s32.totalorder %v1219_v6, %v1224_v10 }
 0x1ab   :  { %v2054_v22 = vsel %vm1472_vm1, 4294967295, %v2053_v22  ;;  %vm1490_vm15 = vmand %vm2057_vm0, %vm2056_vm8  ;;  %994 = vmatpush.msk.msra.mxu0 %vm1342_vm10, %v1062_v24  ;;  %vm2065_vm2 = vcmp.ge.s32.totalorder %v1219_v6, %v1222_v9  ;;  %vm634_vm8 = vcmp.lt.s32.totalorder %v501_v20, %v1224_v10  ;;  %vm2068_vm10 = vcmp.ge.s32.totalorder %v502_v12, %v1222_v9  ;;  %v894_v12 = vld [vmem:[%s1992_s1 + $0x40] sm:$0xff] }
 0x1ac   :  { %vm1504_vm1 = vmand %vm2061_vm13, %vm2060_vm7  ;;  %1033 = vmatpush.msk.msra.mxu3 %vm1357_vm4, %v1062_v24  ;;  %411 = vmatpush.msrb.mxu1 %v369_v27  ;;  %vm2071_vm13 = vcmask 64512   ;;  %vm2072_vm4 = vcmp.lt.s32.totalorder %v532_v15, %v1224_v10  ;;  %v2113_v1 = vmov 0  ;;  %v495_v4 = vadd.s32 160, %v1219_v6 }
 0x1ad   :  { %vm1520_vm7 = vmand %vm2065_vm2, %vm2064_vm11  ;;  %981 = vmatmul.msk.f32.vlgmr.msrb.gmra.mxu1 %vm2071_vm13, %v1238_v19  ;;  %995 = vmatpush.msk.msra.mxu0 %vm1369_vm14, %v1062_v24  ;;  %vm2076_vm13 = vnez %v2022_v61  ;;  %vm2077_vm14 = vnez %v2026_v0  ;;  %vm663_vm11 = vcmp.lt.s32.totalorder %v530_v29, %v1224_v10  ;;  %vm2086_vm2 = vcmp.lt.s32.totalorder %v500_v26, %v1224_v10 }
 0x1ae   :  { %vm1534_vm0 = vmand %vm2068_vm10, %vm635_vm12  ;;  %vm2073_vm12 = vcmp.ge.s32.totalorder %v532_v15, %v1222_v9  ;;  %1000 = vmatpush.msk.msra.mxu1 %vm2076_vm13, %v1062_v24  ;;  %1034 = vmatpush.msk.msra.mxu3 %vm2077_vm14, %v1062_v24  ;;  %vm2081_vm13 = vcmp.lt.s32.totalorder %v531_v23, %v1224_v10  ;;  %vm2082_vm14 = vcmp.ge.s32.totalorder %v531_v23, %v1222_v9  ;;  %v494_v13 = vadd.s32 152, %v1219_v6 }
 0x1af   :  { %vm1550_vm10 = vmand %vm2073_vm12, %vm2072_vm4  ;;  %vm2078_vm4 = vcmp.ge.s32.totalorder %v501_v20, %v1222_v9  ;;  %996 = vmatpush.msk.msra.mxu0 %vm1405_vm9, %v1062_v24  ;;  %vm2085_vm9 = vnez %v2038_v8  ;;  %v525_v8 = vadd.s32 400, %v1219_v6  ;;  %v517_v15 = vadd.s32 336, %v1219_v6 }
 0x1b0   :  { %v2075_v34 = vsel %vm1550_vm10, 4294967295, %v2074_v34  ;;  %vm1567_vm12 = vmand %vm2078_vm4, %vm634_vm8  ;;  %1001 = vmatpush.msk.msra.mxu1 %vm1419_vm5, %v1062_v24  ;;  %1035 = vmatpush.msk.msra.mxu3 %vm2085_vm9, %v1062_v24  ;;  %vm655_vm4 = vcmp.lt.s32.totalorder %v522_v33, %v1224_v10  ;;  %vm2090_vm5 = vcmp.ge.s32.totalorder %v530_v29, %v1222_v9  ;;  %vm2093_vm8 = vnez %v2046_v17 }
 0x1b1   :  { %vm1581_vm10 = vmand %vm2082_vm14, %vm2081_vm13  ;;  %vm2087_vm13 = vcmp.ge.s32.totalorder %v500_v26, %v1222_v9  ;;  %997 = vmatpush.msk.msra.mxu0 %vm1438_vm3, %v1062_v24  ;;  %vm2094_vm3 = vcmp.lt.s32.totalorder %v499_v31, %v1224_v10  ;;  %v524_v17 = vadd.s32 392, %v1219_v6  ;;  %v516_v21 = vadd.s32 328, %v1219_v6 }
 0x1b2   :  { %vm1598_vm14 = vmand %vm2087_vm13, %vm2086_vm2  ;;  %1002 = vmatpush.msk.msra.mxu1 %vm2093_vm8, %v1062_v24  ;;  %1036 = vmatpush.msk.msra.mxu3 %vm1460_vm6, %v1062_v24  ;;  %vm565_vm2 = vcmp.ge.s32.totalorder %v498_v38, %v1222_v9  ;;  %vm631_vm13 = vcmp.lt.s32.totalorder %v498_v38, %v1224_v10  ;;  %vm2098_vm8 = vnez %v2054_v22  ;;  %vm2099_vm6 = vcmp.ge.s32.totalorder %v522_v33, %v1222_v9 }
 0x1b3   :  { %vm1610_vm9 = vmand %vm2090_vm5, %vm663_vm11  ;;  %vm2095_vm11 = vcmp.ge.s32.totalorder %v499_v31, %v1222_v9  ;;  %998 = vmatpush.msk.msra.mxu0 %vm2098_vm8, %v1062_v24  ;;  %vm2102_vm8 = vcmp.lt.s32.totalorder %v529_v36, %v1224_v10  ;;  %v523_v23 = vadd.s32 384, %v1219_v6  ;;  %v492_v26 = vadd.s32 136, %v1219_v6 }
 0x1b4   :  { %v2092_v44 = vsel %vm1610_vm9, 4294967295, %v2091_v44  ;;  %vm1627_vm5 = vmand %vm2095_vm11, %vm2094_vm3  ;;  %1003 = vmatpush.msk.msra.mxu1 %vm1490_vm15, %v1062_v24  ;;  %1037 = vmatpush.msk.msra.mxu3 %vm1504_vm1, %v1062_v24  ;;  %vm595_vm3 = vcmp.ge.s32.totalorder %v528_v43, %v1222_v9  ;;  %vm661_vm11 = vcmp.lt.s32.totalorder %v528_v43, %v1224_v10  ;;  %vm587_vm15 = vcmp.ge.s32.totalorder %v520_v47, %v1222_v9 }
 0x1b5   :  { %vm1639_vm9 = vmand %vm2099_vm6, %vm655_vm4  ;;  %vm2103_vm4 = vcmp.ge.s32.totalorder %v529_v36, %v1222_v9  ;;  %v345_v56 = vpop.f32.mrf.mxu2  ;;  %999 = vmatpush.msk.msra.mxu0 %vm1520_vm7, %v1062_v24  ;;  %vm2108_vm7 = vnez %v2075_v34  ;;  %v2155_v34 = vmov 0  ;;  %v513_v36 = vadd.s32 304, %v1219_v6 }
 0x1b6   :  { %vm1656_vm6 = vmand %vm2103_vm4, %vm2102_vm8  ;;  %v346_v61 = vadd.f32 %v345_v56, %v1226_v11  ;;  %1004 = vmatpush.msk.msra.mxu1 %vm1534_vm0, %v1062_v24  ;;  %1038 = vmatpush.msk.msra.mxu3 %vm2108_vm7, %v1062_v24  ;;  %vm653_vm8 = vcmp.lt.s32.totalorder %v520_v47, %v1224_v10  ;;  %v526_v11 = vadd.s32 408, %v1219_v6  ;;  %vm563_vm7 = vcmp.ge.s32.totalorder %v496_v54, %v1222_v9 }
 0x1b7   :  { %vm1670_vm1 = vmand %vm565_vm2, %vm631_vm13  ;;  %vm2109_vm2 = vcmp.lt.s32.totalorder %v521_v41, %v1224_v10  ;;  %vm2110_vm13 = vcmp.ge.s32.totalorder %v521_v41, %v1222_v9  ;;  %816 = vmatmul.f32.vlgmr.msra.gmra.mxu0 %v274_v51  ;;  %v518_v51 = vadd.s32 344, %v1219_v6  ;;  %v511_v38 = vadd.s32 288, %v1219_v6  ;;  %v464_v41 = vpop.permute.xlu1 %463 }
 0x1b8   :  { %vm1688_vm4 = vmand %vm2110_vm13, %vm2109_vm2  ;;  %v370_v5 = vmax.f32 %v346_v61, 0.0  ;;  %1005 = vmatpush.msk.msra.mxu1 %vm1567_vm12, %v1062_v24  ;;  %1039 = vmatpush.msk.msra.mxu3 %vm1581_vm10, %v1062_v24  ;;  %vm629_vm2 = vcmp.lt.s32.totalorder %v496_v54, %v1224_v10  ;;  %vm593_vm10 = vcmp.ge.s32.totalorder %v526_v11, %v1222_v9  ;;  %v896_v61 = vld [vmem:[%s1992_s1 + $0x70] sm:$0xff] }
 0x1b9   :  { %vm1701_vm0 = vmand %vm595_vm3, %vm661_vm11  ;;  %vm2115_vm3 = vcmp.lt.s32.totalorder %v497_v45, %v1224_v10  ;;  %vm2116_vm11 = vcmp.ge.s32.totalorder %v497_v45, %v1222_v9 }
 0x1ba   :  { %v2114_v1 = vsel %vm1701_vm0, 4294967295, %v2113_v1  ;;  %vm1718_vm13 = vmand %vm2116_vm11, %vm2115_vm3  ;;  %1006 = vmatpush.msk.msra.mxu1 %vm1598_vm14, %v1062_v24  ;;  %vm2121_vm3 = vnez %v2092_v44  ;;  %vm2122_vm11 = vcmp.lt.s32.totalorder %v527_v52, %v1224_v10  ;;  %vm659_vm0 = vcmp.lt.s32.totalorder %v526_v11, %v1224_v10  ;;  %431 = vmatpush.msra.mxu2 %v370_v5 }
 0x1bb   :  { %vm1727_vm12 = vmand %vm587_vm15, %vm653_vm8  ;;  %1040 = vmatpush.msk.msra.mxu3 %vm2121_vm3, %v1062_v24  ;;  %vm2123_vm15 = vcmp.ge.s32.totalorder %v527_v52, %v1222_v9  ;;  %vm585_vm3 = vcmp.ge.s32.totalorder %v518_v51, %v1222_v9 }
 0x1bc   :  { %v2120_v7 = vsel %vm1727_vm12, 4294967295, %v2119_v7  ;;  %vm1744_vm8 = vmand %vm2123_vm15, %vm2122_vm11  ;;  %vm2128_vm11 = vcmask 64512   ;;  %1007 = vmatpush.msk.msra.mxu1 %vm1627_vm5, %v1062_v24  ;;  %vm2129_vm15 = vcmp.lt.s32.totalorder %v519_v60, %v1224_v10  ;;  %vm651_vm12 = vcmp.lt.s32.totalorder %v518_v51, %v1224_v10  ;;  %1016 = vmatpush.msk.msrb.mxu2 %vm1639_vm9, %v1062_v24 }
 0x1bd   :  { %vm1751_vm14 = vmand %vm563_vm7, %vm629_vm2  ;;  %982 = vmatmul.msk.f32.vlgmr.msra.gmra.mxu2 %vm2128_vm11, %v1238_v19  ;;  %vm2130_vm7 = vcmp.ge.s32.totalorder %v519_v60, %v1222_v9  ;;  %1041 = vmatpush.msk.msra.mxu3 %vm1656_vm6, %v1062_v24  ;;  %vm592_vm11 = vcmp.ge.s32.totalorder %v525_v8, %v1222_v9  ;;  %vm2135_vm9 = vcmp.lt.s32.totalorder %v495_v4, %v1224_v10 }
 0x1be   :  { %vm1767_vm2 = vmand %vm2130_vm7, %vm2129_vm15  ;;  %vm658_vm15 = vcmp.lt.s32.totalorder %v525_v8, %v1224_v10  ;;  %1008 = vmatpush.msk.msra.mxu1 %vm1670_vm1, %v1062_v24  ;;  %vm2136_vm6 = vcmp.ge.s32.totalorder %v495_v4, %v1222_v9  ;;  %1017 = vmatpush.msk.msrb.mxu2 %vm1688_vm4, %v1062_v24  ;;  %vm2139_vm1 = vnez %v2114_v1  ;;  %v893_v8 = vld [vmem:[%s1992_s1 + $0x38] sm:$0xff] }
 0x1bf   :  { %vm1784_vm5 = vmand %vm593_vm10, %vm659_vm0  ;;  %vm627_vm10 = vcmp.lt.s32.totalorder %v494_v13, %v1224_v10  ;;  %1042 = vmatpush.msk.msra.mxu3 %vm2139_vm1, %v1062_v24  ;;  %vm650_vm0 = vcmp.lt.s32.totalorder %v517_v15, %v1224_v10  ;;  %vm2144_vm1 = vnez %v2120_v7  ;;  %v892_v7 = vld [vmem:[%s1992_s1 + $0x30] sm:$0xff] }
 0x1c0   :  { %vm1798_vm7 = vmand %vm2136_vm6, %vm2135_vm9  ;;  %vm584_vm6 = vcmp.ge.s32.totalorder %v517_v15, %v1222_v9  ;;  %1009 = vmatpush.msk.msra.mxu1 %vm1718_vm13, %v1062_v24  ;;  %1018 = vmatpush.msk.msrb.mxu2 %vm2144_vm1, %v1062_v24  ;;  %vm2145_vm13 = vcmp.ge.s32.totalorder %v494_v13, %v1222_v9  ;;  %vm649_vm1 = vcmp.lt.s32.totalorder %v516_v21, %v1224_v10 }
 0x1c1   :  { %vm1815_vm9 = vmand %vm585_vm3, %vm651_vm12  ;;  %vm657_vm3 = vcmp.lt.s32.totalorder %v524_v17, %v1224_v10  ;;  %1043 = vmatpush.msk.msra.mxu3 %vm1744_vm8, %v1062_v24  ;;  %vm626_vm12 = vcmp.lt.s32.totalorder %v493_v18, %v1224_v10 }
 0x1c2   :  { %vm1827_vm4 = vmand %vm592_vm11, %vm658_vm15  ;;  %vm560_vm15 = vcmp.ge.s32.totalorder %v493_v18, %v1222_v9  ;;  %1010 = vmatpush.msk.msra.mxu1 %vm1751_vm14, %v1062_v24  ;;  %1019 = vmatpush.msk.msrb.mxu2 %vm1767_vm2, %v1062_v24  ;;  %vm2150_vm14 = vcmp.ge.s32.totalorder %v524_v17, %v1222_v9  ;;  %v911_v18 = vpop.permute.xlu0 %910 }
 0x1c3   :  { %vm1844_vm11 = vmand %vm2145_vm13, %vm627_vm10  ;;  %vm583_vm10 = vcmp.ge.s32.totalorder %v516_v21, %v1222_v9  ;;  %1044 = vmatpush.msk.msra.mxu3 %vm1784_vm5, %v1062_v24  ;;  %vm656_vm13 = vcmp.lt.s32.totalorder %v523_v23, %v1224_v10  ;;  %vm559_vm5 = vcmp.ge.s32.totalorder %v492_v26, %v1222_v9 }
 0x1c4   :  { %vm1856_vm8 = vmand %vm584_vm6, %vm650_vm0  ;;  %vm590_vm6 = vcmp.ge.s32.totalorder %v523_v23, %v1222_v9  ;;  %1011 = vmatpush.msk.msra.mxu1 %vm1798_vm7, %v1062_v24  ;;  %1020 = vmatpush.msk.msrb.mxu2 %vm1815_vm9, %v1062_v24 }
 0x1c5   :  { %vm1873_vm0 = vmand %vm2150_vm14, %vm657_vm3  ;;  %vm625_vm3 = vcmp.lt.s32.totalorder %v492_v26, %v1224_v10  ;;  %1045 = vmatpush.msk.msra.mxu3 %vm1827_vm4, %v1062_v24  ;;  %vm558_vm14 = vcmp.ge.s32.totalorder %v491_v30, %v1222_v9  ;;  %vm624_vm4 = vcmp.lt.s32.totalorder %v491_v30, %v1224_v10 }
 0x1c6   :  { %vm1885_vm2 = vmand %vm560_vm15, %vm626_vm12  ;;  %vm582_vm12 = vcmp.ge.s32.totalorder %v515_v28, %v1222_v9  ;;  %vm648_vm15 = vcmp.lt.s32.totalorder %v515_v28, %v1224_v10  ;;  %1012 = vmatpush.msk.msra.mxu1 %vm1844_vm11, %v1062_v24  ;;  %1021 = vmatpush.msk.msrb.mxu2 %vm1856_vm8, %v1062_v24 }
 0x1c7   :  { %vm1899_vm7 = vmand %vm583_vm10, %vm649_vm1  ;;  %1046 = vmatpush.msk.msra.mxu3 %vm1873_vm0, %v1062_v24  ;;  %vm581_vm1 = vcmp.ge.s32.totalorder %v514_v32, %v1222_v9  ;;  %vm580_vm0 = vcmp.ge.s32.totalorder %v513_v36, %v1222_v9 }
 0x1c8   :  { %v2156_v34 = vsel %vm1899_vm7, 4294967295, %v2155_v34  ;;  %vm720_vm9 = vmand %vm590_vm6, %vm656_vm13  ;;  %vm647_vm7 = vcmp.lt.s32.totalorder %v514_v32, %v1224_v10  ;;  %1013 = vmatpush.msk.msra.mxu1 %vm1885_vm2, %v1062_v24  ;;  %vm646_vm13 = vcmp.lt.s32.totalorder %v513_v36, %v1224_v10 }
 0x1c9   :  { %vm689_vm10 = vmand %vm559_vm5, %vm625_vm3  ;;  %vm2157_vm6 = vnez %v2156_v34  ;;  %1047 = vmatpush.msk.msra.mxu3 %vm720_vm9, %v1062_v24  ;;  %vm579_vm5 = vcmp.ge.s32.totalorder %v512_v37, %v1222_v9  ;;  %vm645_vm3 = vcmp.lt.s32.totalorder %v512_v37, %v1224_v10 }
 0x1ca   :  { %vm712_vm11 = vmand %vm582_vm12, %vm648_vm15  ;;  %1022 = vmatpush.msk.msrb.mxu2 %vm2157_vm6, %v1062_v24  ;;  %885 = vmatmul.f32.vlgmr.msra.gmra.mxu3 %v277_v58  ;;  %vm578_vm15 = vcmp.ge.s32.totalorder %v511_v38, %v1222_v9  ;;  %v508_v58 = vadd.s32 264, %v1219_v6 }
 0x1cb   :  { %vm688_vm8 = vmand %vm558_vm14, %vm624_vm4  ;;  %1014 = vmatpush.msk.msra.mxu1 %vm689_vm10, %v1062_v24  ;;  %vm577_vm14 = vcmp.ge.s32.totalorder %v510_v40, %v1222_v9  ;;  %vm643_vm4 = vcmp.lt.s32.totalorder %v510_v40, %v1224_v10 }
 0x1cc   :  { %vm711_vm2 = vmand %vm581_vm1, %vm647_vm7  ;;  %1023 = vmatpush.msk.msrb.mxu2 %vm712_vm11, %v1062_v24  ;;  %vm644_vm7 = vcmp.lt.s32.totalorder %v511_v38, %v1224_v10  ;;  %vm576_vm1 = vcmp.ge.s32.totalorder %v509_v57, %v1222_v9  ;;  %vm642_vm11 = vcmp.lt.s32.totalorder %v509_v57, %v1224_v10 }
 0x1cd   :  { %1015 = vmatpush.msk.msra.mxu1 %vm688_vm8, %v1062_v24  ;;  %vm710_vm12 = vmand %vm580_vm0, %vm646_vm13  ;;  %vm575_vm8 = vcmp.ge.s32.totalorder %v508_v58, %v1222_v9  ;;  %vm641_vm0 = vcmp.lt.s32.totalorder %v508_v58, %v1224_v10 }
 0x1ce   :  { %1024 = vmatpush.msk.msrb.mxu2 %vm711_vm2, %v1062_v24  ;;  %839 = vmatmul.f32.vlgmr.msra.gmra.mxu1 %v275_v63  ;;  %vm709_vm9 = vmand %vm579_vm5, %vm645_vm3  ;;  %vm574_vm2 = vcmp.ge.s32.totalorder %v507_v62, %v1222_v9  ;;  %vm640_vm5 = vcmp.lt.s32.totalorder %v507_v62, %v1224_v10 }
 0x1cf   :  { %vm708_vm10 = vmand %vm578_vm15, %vm644_vm7  ;;  %vm913_vm15 = vcmask 130048  }
 0x1d0   :  { %1025 = vmatpush.msk.msrb.mxu2 %vm710_vm12, %v1062_v24  ;;  %vm707_vm6 = vmand %vm577_vm14, %vm643_vm4 }
 0x1d1   :  { %vm706_vm13 = vmand %vm576_vm1, %vm642_vm11 }
 0x1d2   :  { %1026 = vmatpush.msk.msrb.mxu2 %vm709_vm9, %v1062_v24  ;;  %vm705_vm3 = vmand %vm575_vm8, %vm641_vm0 }
 0x1d3   :  { %vm704_vm12 = vmand %vm574_vm2, %vm640_vm5 }
 0x1d4   :  { %1027 = vmatpush.msk.msrb.mxu2 %vm708_vm10, %v1062_v24 }
 0x1d6   :  { %1028 = vmatpush.msk.msrb.mxu2 %vm707_vm6, %v1062_v24 }
 0x1d8   :  { %1029 = vmatpush.msk.msrb.mxu2 %vm706_vm13, %v1062_v24 }
 0x1da   :  { %1030 = vmatpush.msk.msrb.mxu2 %vm705_vm3, %v1062_v24 }
 0x1dc   :  { %1031 = vmatpush.msk.msrb.mxu2 %vm704_vm12, %v1062_v24 }
 0x1dd   :  { %862 = vmatmul.f32.vlgmr.msrb.gmra.mxu2 %v276_v3 }
 0x213   :  { %v393_v63 = vpop.f32.mrf.mxu0 }
 0x214   :  { %v456_v6 = vadd.f32 %v393_v63, %v1177_v35 }
 0x216   :  { %v466_v42 = vadd.f32 %v464_v41, %v456_v6 }
 0x218   :  { %v470_v43 = vmax.f32 %v466_v42, 0.0 }
 0x21a   :  { %819 = vmatmul.f32.gmra.mxu0 %v470_v43 }
 0x22a   :  { %v413_v9 = vpop.f32.mrf.mxu1 }
 0x22b   :  { %v457_v10 = vadd.f32 %v413_v9, %v1305_v39  ;;  %v895_v39 = vld [vmem:[%s1992_s1 + $0x68] sm:$0xff] }
 0x22c   :  { %v453_v44 = vpop.f32.mrf.mxu3  ;;  %900 = vperm.xlu2 %1060, %v895_v39  }
 0x22d   :  { %v459_v45 = vadd.f32 %v453_v44, %v1187_v49  ;;  %v467_v46 = vadd.f32 %v464_v41, %v457_v10 }
 0x22f   :  { %v471_v47 = vmax.f32 %v467_v46, 0.0  ;;  %v469_v50 = vadd.f32 %v464_v41, %v459_v45 }
 0x231   :  { %842 = vmatmul.f32.gmra.mxu1 %v471_v47  ;;  %v473_v24 = vmax.f32 %v469_v50, 0.0 }
 0x233   :  { %888 = vmatmul.f32.gmra.mxu3 %v473_v24 }
 0x234   :  { %v817_v54 = vpop.f32.mrf.mxu0  ;;  %905 = vperm.xlu2 %1060, %v896_v61  }
 0x240   :  { %v433_v2 = vpop.f32.mrf.mxu2 }
 0x241   :  { %v458_v3 = vadd.f32 %v433_v2, %v1199_v55 }
 0x243   :  { %v468_v35 = vadd.f32 %v464_v41, %v458_v3 }
 0x245   :  { %v472_v52 = vmax.f32 %v468_v35, 0.0 }
 0x247   :  { %865 = vmatmul.f32.gmra.mxu2 %v472_v52 }
 0x24b   :  { %v840_v53 = vpop.f32.mrf.mxu1 }
 0x24c   :  { %v841_v0 = vadd.f32 %v840_v53, %v817_v54 }
 0x24d   :  { %v886_v49 = vpop.f32.mrf.mxu3 }
 0x260   :  { %v863_v56 = vpop.f32.mrf.mxu2 }
 0x261   :  { %v864_v1 = vadd.f32 %v863_v56, %v841_v0 }
 0x263   :  { %v887_v51 = vadd.f32 %v886_v49, %v864_v1 }
 0x286   :  { %v901_v13 = vpop.permute.xlu2 %900 }
 0x28e   :  { %v906_v16 = vpop.permute.xlu2 %905 }
 0x297   :  { %v820_v60 = vpop.f32.mrf.mxu0 }
 0x2ae   :  { %v843_v59 = vpop.f32.mrf.mxu1 }
 0x2af   :  { %v844_v55 = vadd.f32 %v843_v59, %v820_v60 }
 0x2b6   :  { %v889_v5 = vpop.f32.mrf.mxu3 }
 0x2ca   :  { %v866_v11 = vpop.f32.mrf.mxu2 }
 0x2cb   :  { %v867_v4 = vadd.f32 %v866_v11, %v844_v55 }
 0x2cd   :  { %v890_v48 = vadd.f32 %v889_v5, %v867_v4 }
 0x2cf   :  { %937 = vmatpush.msrb.mxu0 %v890_v48 }
 0x2d1   :  { %938 = vmatpush.msrb.mxu0 %v887_v51 }
 0x2d2   :  { %1048 = vmatmul.msk.f32.vlgmr.msrb.gmra.mxu0 %vm913_vm15, %v892_v7 }
 0x2da   :  { %1049 = vmatmul.msk.f32.gmra.mxu0 %vm913_vm15, %v893_v8 }
 0x2e2   :  { %1050 = vmatmul.msk.f32.gmra.mxu0 %vm913_vm15, %v894_v12 }
 0x34f   :  { %v940_v14 = vpop.f32.mrf.mxu0 }
 0x350   :  { %v941_v15 = vadd.f32 %v940_v14, %v901_v13 }
 0x352   :  { %949 = vst [vmem:[%s1993_s2] sm:$0xff] %v941_v15 }
 0x357   :  { %v943_v17 = vpop.f32.mrf.mxu0 }
 0x358   :  { %v944_v19 = vadd.f32 %v943_v17, %v906_v16 }
 0x35a   :  { %950 = vst [vmem:[%s1993_s2 + $0x8] sm:$0xff] %v944_v19 }
 0x35f   :  { %v946_v20 = vpop.f32.mrf.mxu0 }
 0x360   :  { %v947_v21 = vadd.f32 %v946_v20, %v911_v18 }
 0x362   :  { %951 = vst [vmem:[%s1993_s2 + $0x10] sm:$0xff] %v947_v21 }

</bundles_post_ra>
